<compile_context>
chip_gen: v7x
topology: tpu7x:2x2x1
jax: 0.10.0
libtpu: 0.0.40
codegen_flags: <defaults>
</compile_context>

<pallas_src>
import jax
import jax.numpy as jnp
from jax.experimental import pallas as pl
from jax.experimental.pallas import tpu as pltpu

IN_FEATURES = 20
OUT_FEATURES = 1
_DEFAULT_TILE_M = 1024
_MIN_PALLAS_ROWS = 512


def _round_up(n, m):
    return ((n + m - 1) // m) * m


def _criticz_kernel(x_ref, w_ref, b_ref, o_ref):
    # x_ref: [TILE_M, 20] (VMEM)   w_ref: [1, 20] (VMEM)
    # b_ref: [1]          (SMEM)   o_ref: [TILE_M, 1] (VMEM)
    x = x_ref[...].astype(jnp.float32)
    w = w_ref[...].astype(jnp.float32)            # (1, 20) broadcasts over rows
    # VPU multiply + lane reduction; MXU would be ~0.1% utilised at K=20, N=1.
    acc = jnp.sum(x * w, axis=-1, keepdims=True)  # (TILE_M, 1) f32
    o_ref[...] = (acc + b_ref[0]).astype(o_ref.dtype)


def criticz_forward_pallas(x, w, b, *, tile_m=_DEFAULT_TILE_M):
    """x: [M, 20], w: [1, 20] (torch Linear layout), b: [1] -> [M, 1]."""
    M = x.shape[0]
    # Tile size: multiple of 8 (sublane), no larger than the (padded) batch.
    tm = _round_up(min(tile_m, _round_up(M, 8)), 8)
    m_pad = _round_up(M, tm)
    x_p = jnp.pad(x, ((0, m_pad - M), (0, 0))) if m_pad != M else x

    out = pl.pallas_call(
        _criticz_kernel,
        out_shape=jax.ShapeDtypeStruct((m_pad, OUT_FEATURES), x.dtype),
        grid=(m_pad // tm,),
        in_specs=[
            pl.BlockSpec((tm, IN_FEATURES), lambda i: (i, 0)),      # row tile
            pl.BlockSpec((1, IN_FEATURES), lambda i: (0, 0)),       # weight row
            pl.BlockSpec(memory_space=pltpu.MemorySpace.SMEM),      # bias scalar
        ],
        out_specs=pl.BlockSpec((tm, OUT_FEATURES), lambda i: (i, 0)),
        compiler_params=pltpu.CompilerParams(
            # Row tiles are independent -> shard across TCs on v7x megacore.
            dimension_semantics=("parallel",),
        ),
        cost_estimate=pl.CostEstimate(
            flops=2 * m_pad * IN_FEATURES,
            transcendentals=0,
            bytes_accessed=m_pad * IN_FEATURES * 4 + m_pad * OUT_FEATURES * 4
            + (IN_FEATURES + OUT_FEATURES) * 4,
        ),
    )(x_p, w, b)
    return out[:M] if m_pad != M else out


def criticz_forward(x, w, b):
    """Dispatcher: tiny batches go straight to XLA (kernel overhead dominates)."""
    if x.shape[0] < _MIN_PALLAS_ROWS:
        return x @ jnp.transpose(w) + b.reshape(1, OUT_FEATURES)
    return criticz_forward_pallas(x, w, b)


def reference_forward(x, w, b):
    return x @ jnp.transpose(w) + b.reshape(1, OUT_FEATURES)


if __name__ == "__main__":
    key = jax.random.PRNGKey(0)
    kx1, kx2, kw, kb = jax.random.split(key, 4)

    # Deterministic synthetic parameters (torch Linear layout: W [1,20], b [1]).
    w = jax.random.uniform(kw, (OUT_FEATURES, IN_FEATURES), jnp.float32,
                           minval=-0.2, maxval=0.2)
    b = jax.random.uniform(kb, (OUT_FEATURES,), jnp.float32,
                           minval=-0.2, maxval=0.2)

    # 1) Small batch (module-typical shape): force the Pallas path once so the
    #    kernel itself is exercised, and also check the dispatcher fast path.
    M_small = 8
    x_small = jax.random.normal(kx1, (M_small, IN_FEATURES), jnp.float32)
    out_small = jax.block_until_ready(criticz_forward_pallas(x_small, w, b))
    ref_small = reference_forward(x_small, w, b)
    assert out_small.shape == (M_small, OUT_FEATURES), out_small.shape
    assert jnp.allclose(out_small, ref_small, atol=1e-5, rtol=1e-5), (
        f"small: max abs err {jnp.max(jnp.abs(out_small - ref_small))}")
    out_disp = jax.block_until_ready(criticz_forward(x_small, w, b))
    assert jnp.allclose(out_disp, ref_small, atol=1e-5, rtol=1e-5)

    # 2) Larger batch (not a multiple of the tile) exercising the tiled,
    #    double-buffered, megacore-parallel grid and the partial-tile padding.
    M_big = 2048 + 40
    x_big = jax.random.normal(kx2, (M_big, IN_FEATURES), jnp.float32)
    out_big = jax.block_until_ready(criticz_forward_pallas(x_big, w, b))
    ref_big = reference_forward(x_big, w, b)
    assert out_big.shape == (M_big, OUT_FEATURES), out_big.shape
    assert jnp.allclose(out_big, ref_big, atol=1e-4, rtol=1e-5), (
        f"big: max abs err {jnp.max(jnp.abs(out_big - ref_big))}")

    print("KERNEL_OK")
</pallas_src>

<mosaic_0001>
module attributes {stable_mosaic.version = 11 : i64} {
  func.func @_criticz_kernel(%arg0: i32, %arg1: memref<8x20xf32, #tpu.memory_space<vmem>>, %arg2: memref<1x20xf32, #tpu.memory_space<vmem>>, %arg3: memref<1xf32, #tpu.memory_space<smem>>, %arg4: memref<8x1xf32, #tpu.memory_space<vmem>>) attributes {dimension_semantics = [#tpu.dimension_semantics<parallel>], iteration_bounds = array<i64: 1>, scalar_prefetch = 0 : i64, scratch_operands = 0 : i64, tpu.core_type = #tpu.core_type<tc>, window_params = [{transform_indices = @transform_0, window_bounds = array<i64: 8, 20>}, {pipeline_mode = #tpu.pipeline_mode<synchronous>, transform_indices = @transform_1, window_bounds = array<i64: 1, 20>}, {transform_indices = @transform_2, window_bounds = array<i64: 1>}, {transform_indices = @transform_3, window_bounds = array<i64: 8, 1>}]} {
    %c0 = arith.constant 0 : index
    %c0_0 = arith.constant 0 : index
    %0 = vector.load %arg1[%c0, %c0_0] : memref<8x20xf32, #tpu.memory_space<vmem>>, vector<8x20xf32>
    %c0_1 = arith.constant 0 : index
    %c0_2 = arith.constant 0 : index
    %1 = vector.load %arg2[%c0_1, %c0_2] : memref<1x20xf32, #tpu.memory_space<vmem>>, vector<1x20xf32>
    %2 = vector.broadcast %1 : vector<1x20xf32> to vector<8x20xf32>
    %3 = arith.mulf %0, %2 : vector<8x20xf32>
    %cst = arith.constant dense<0.000000e+00> : vector<8xf32>
    %4 = vector.multi_reduction <add>, %3, %cst [1] : vector<8x20xf32> to vector<8xf32>
    %5 = vector.shape_cast %4 : vector<8xf32> to vector<8x1xf32>
    %c0_3 = arith.constant 0 : index
    %6 = memref.load %arg3[%c0_3] : memref<1xf32, #tpu.memory_space<smem>>
    %7 = vector.broadcast %6 : f32 to vector<8x1xf32>
    %8 = arith.addf %5, %7 : vector<8x1xf32>
    %c0_4 = arith.constant 0 : index
    %c0_5 = arith.constant 0 : index
    %9 = vector.load %arg4[%c0_4, %c0_5] : memref<8x1xf32, #tpu.memory_space<vmem>>, vector<8x1xf32>
    tpu.vector_store %arg4[%c0_4, %c0_5], %8 {strides = array<i32>} : memref<8x1xf32, #tpu.memory_space<vmem>>, vector<8x1xf32>,
    return
  }
  func.func @transform_0(%arg0: i32) -> (i32, i32) {
    %c0_i32 = arith.constant 0 : i32
    %c0_i32_0 = arith.constant 0 : i32
    return %arg0, %c0_i32 : i32, i32
  }
  func.func @transform_1(%arg0: i32) -> (i32, i32) {
    %c0_i32 = arith.constant 0 : i32
    %c0_i32_0 = arith.constant 0 : i32
    %c0_i32_1 = arith.constant 0 : i32
    return %c0_i32, %c0_i32_0 : i32, i32
  }
  func.func @transform_2(%arg0: i32) -> i32 {
    %c0_i32 = arith.constant 0 : i32
    %c0_i32_0 = arith.constant 0 : i32
    return %c0_i32 : i32
  }
  func.func @transform_3(%arg0: i32) -> (i32, i32) {
    %c0_i32 = arith.constant 0 : i32
    %c0_i32_0 = arith.constant 0 : i32
    return %arg0, %c0_i32 : i32, i32
  }
}

</mosaic_0001>

<bundles_post_ra>
// kernel: tpu_custom_call.1
= control target key start
LH: loop header
LB: loop body
LE: loop exit
PB: predicated region body
PF: predicated region fallthrough
CT: control target
= control target key end

     0   :  { %9 = vsyncpa [#allocation4], 0  ;;  %s76_s12 = smov [#allocation3]   ;;  %s118_s0 = inlined_call_operand.hbm [shape: f32[8,20], index: 0, kind: input, shape index: {}]   ;;  %s119_s1 = inlined_call_operand.vmem [shape: f32[1,20], index: 1, kind: input, shape index: {}]   ;;  %s120_s2 = inlined_call_operand.<no memory space> [shape: f32[1], index: 2, kind: input, shape index: {}]   ;;  %s121_s3 = inlined_call_operand.vmem [shape: f32[8,1], index: 3, kind: output, shape index: {}]  }
   0x1   :  { %s16_s13 = sshll.u32 %s76_s12, 4  ;;  %s52_s16 = scalar_lea.hbm %s118_s0, 128  ;;  %s17_s13 = int_to_ptr.vmem [resolvable:$true] %s16_s13 }
   0x2   :  { %p53_p0 = scmp.ne.s32.totalorder %s118_s0, %s52_s16  ;;  %p56_p1 = scmp.lt.u32.totalorder %s52_s16, %s118_s0 }
   0x4   :  { %p58_p2 = pnand %p56_p1, %p53_p0 }
   0x6   :  { %61 = shalt.err (!%p58_p2)
}
   0x7   :  { %s62_s21 = scalar_lea.vmem %s17_s13, 128  ;;  %p67_p4 = scmp.lt.s32.totalorder %s17_s13, %s17_s13 }
   0x8   :  { %p63_p3 = scmp.ne.s32.totalorder %s17_s13, %s62_s21  ;;  %p68_p5 = scmp.lt.s32.totalorder %s62_s21, %s62_s21 }
   0xa   :  { %p69_p6 = por %p68_p5, %p67_p4 }
   0xc   :  { %p70_p7 = pnand %p69_p6, %p63_p3 }
   0xe   :  { %73 = shalt.err (!%p70_p7)
}
   0xf   :  { %19 = dma.hbm_to_vmem [thread:$0]  %s118_s0, 128, %s17_s13, [#allocation4]  }
  0x10   :  { %74 = dma.done.wait [#allocation4], 128  }
  0x11   :  { %75 = vsyncadd [#allocation4], 4294967168  ;;  %v27_v0 = vld [vmem:[#allocation3] sm:$0xff]  ;;  %vm36_vm0 = vcmask 162816   ;;  %v41_v4 = vstv %s120_s2  ;;  %vm43_vm1 = vcmask 7168  }
  0x12   :  { %v50_v1 = vld [vmem:[%s119_s1] ss:$0 sm:$0xff] }
  0x13   :  { %v35_v2 = vmul.f32 %v50_v1, %v27_v0 }
  0x15   :  { %v37_v3 = vsel %vm36_vm0, %v35_v2, 0.0 }
  0x16   :  { %38 = vadd.xlane.f32.xlu0 %v37_v3 }
  0xa3   :  { %v39_v5 = vpop.xlane.xlu0 %38 }
  0xa4   :  { %v42_v6 = vadd.f32 %v41_v4, %v39_v5 }
  0xa6   :  { %44 = vst.msk [vmem:[%s121_s3] sm:$0xff] %vm43_vm1, %v42_v6 }
  0xa7   :  { %49 = vsyncpa [#allocation4], 1 }

</bundles_post_ra>
